<compile_context>
chip_gen: v7x
topology: tpu7x:2x2x1
jax: 0.10.0
libtpu: 0.0.40
codegen_flags: <defaults>
</compile_context>

<pallas_src>
import jax
import jax.numpy as jnp
from jax.experimental import pallas as pl
from jax.experimental.pallas import tpu as pltpu

INPUT_SIZE = 1
HIDDEN = 32


def _rnn_chunk_kernel(x_ref, h0_ref, wih_ref, whh_ref, b_ref, wout_ref, bout_ref,
                      y_ref, hout_ref):
    """One time-chunk per grid iteration; hidden state carried in hout_ref.

    x_ref   : (Tc, B, 1)  inputs for this time chunk (time-major)
    h0_ref  : (B, H)      initial hidden state
    wih_ref : (1, H)      W_ih^T  (INPUT_SIZE == 1)
    whh_ref : (H, H)      W_hh^T
    b_ref   : (1, H)      b_ih + b_hh (pre-combined in the wrapper)
    wout_ref: (1, H)      out.weight (Linear(32 -> 1))
    bout_ref: (1,)        out.bias, in SMEM (scalar read)
    y_ref   : (Tc, B)     per-timestep outputs for this chunk
    hout_ref: (B, H)      final hidden state; resident accumulator / h carry
    """
    c = pl.program_id(0)

    @pl.when(c == 0)
    def _():
        hout_ref[...] = h0_ref[...]

    w_hh = whh_ref[...]       # (H, H), held across the chunk's recurrence
    w_ih = wih_ref[...]       # (1, H)
    b = b_ref[...]            # (1, H)
    w_out = wout_ref[...]     # (1, H)
    b_out = bout_ref[0]       # scalar (SMEM)

    t_chunk = x_ref.shape[0]

    def step(t, h):
        # Input projection fused into the step (I == 1 -> broadcast FMA, VPU).
        pre = x_ref[t] * w_ih + b                                   # (B, 1)*(1, H) -> (B, H)
        h_new = jnp.tanh(
            pre + jnp.dot(h, w_hh, preferred_element_type=jnp.float32))
        # Linear(32 -> 1) fused into the step; off the serial chain.
        # (1, H) x (B, H) contracting on H -> (1, B) row, stored lane-dense.
        y_row = jax.lax.dot_general(
            w_out, h_new, (((1,), (1,)), ((), ())),
            preferred_element_type=jnp.float32) + b_out             # (1, B)
        y_ref[pl.ds(t, 1), :] = y_row
        return h_new

    h_last = jax.lax.fori_loop(0, t_chunk, step, hout_ref[...],
                               unroll=min(8, t_chunk))
    hout_ref[...] = h_last


def _pick_time_chunk(t):
    """Largest (8,128)-friendly chunk that divides T; falls back to whole T."""
    for c in (128, 64, 32, 16, 8):
        if t >= c and t % c == 0:
            return c
    return t


def rnn_forward(x, h_state, params, *, t_chunk=None):
    """x: (B, T, I) float32, h_state: (1, B, H) float32.
    Returns (outs (B, T, 1), h_state_new (1, B, H)) — same semantics as torch."""
    B, T, I = x.shape
    assert I == INPUT_SIZE == 1, "kernel specializes the spec's INPUT_SIZE == 1"
    H = HIDDEN
    w_ih, w_hh, b_ih, b_hh, w_out, b_out = params

    if t_chunk is None:
        t_chunk = _pick_time_chunk(T)
    assert T % t_chunk == 0

    x_tbi = jnp.transpose(x, (1, 0, 2)).astype(jnp.float32)      # (T, B, 1)
    h0 = h_state[0].astype(jnp.float32)                          # (B, H)

    wih_row = w_ih.T.astype(jnp.float32)                         # (1, H)
    whh_t = w_hh.T.astype(jnp.float32)                           # (H, H)
    b_comb = (b_ih + b_hh)[None, :].astype(jnp.float32)          # (1, H)
    wout_row = w_out.astype(jnp.float32)                         # (1, H)
    bout = b_out.astype(jnp.float32)                             # (1,)

    grid_spec = pltpu.PrefetchScalarGridSpec(
        num_scalar_prefetch=0,
        grid=(T // t_chunk,),                                    # sequential time chunks
        in_specs=[
            pl.BlockSpec((t_chunk, B, I), lambda c: (c, 0, 0)),  # x chunk
            pl.BlockSpec((B, H), lambda c: (0, 0)),              # h0
            pl.BlockSpec((1, H), lambda c: (0, 0)),              # W_ih^T row
            pl.BlockSpec((H, H), lambda c: (0, 0)),              # W_hh^T
            pl.BlockSpec((1, H), lambda c: (0, 0)),              # b_ih + b_hh
            pl.BlockSpec((1, H), lambda c: (0, 0)),              # out.weight
            pl.BlockSpec(memory_space=pltpu.MemorySpace.SMEM),   # out.bias (scalar)
        ],
        out_specs=[
            pl.BlockSpec((t_chunk, B), lambda c: (c, 0)),        # y chunk
            pl.BlockSpec((B, H), lambda c: (0, 0)),              # final hidden (h carry)
        ],
    )

    y_tb, h_out = pl.pallas_call(
        _rnn_chunk_kernel,
        grid_spec=grid_spec,
        out_shape=(
            jax.ShapeDtypeStruct((T, B), jnp.float32),
            jax.ShapeDtypeStruct((B, H), jnp.float32),
        ),
        compiler_params=pltpu.CompilerParams(
            dimension_semantics=("arbitrary",),                  # time is serial
            vmem_limit_bytes=32 * 1024 * 1024,
        ),
    )(x_tbi, h0, wih_row, whh_t, b_comb, wout_row, bout)

    outs = jnp.transpose(y_tb, (1, 0))[:, :, None]               # (B, T, 1)
    return outs, h_out[None, :, :]                               # (1, B, H)


def init_params(key):
    """Deterministic init matching the torch module's parameter shapes
    (uniform(-1/sqrt(H), 1/sqrt(H)), as PyTorch does by default)."""
    k = 1.0 / jnp.sqrt(jnp.float32(HIDDEN))
    keys = jax.random.split(key, 6)
    u = lambda kk, shape: jax.random.uniform(kk, shape, jnp.float32, -k, k)
    w_ih = u(keys[0], (HIDDEN, INPUT_SIZE))   # rnn.weight_ih_l0
    w_hh = u(keys[1], (HIDDEN, HIDDEN))       # rnn.weight_hh_l0
    b_ih = u(keys[2], (HIDDEN,))              # rnn.bias_ih_l0
    b_hh = u(keys[3], (HIDDEN,))              # rnn.bias_hh_l0
    w_out = u(keys[4], (1, HIDDEN))           # out.weight
    b_out = u(keys[5], (1,))                  # out.bias
    return (w_ih, w_hh, b_ih, b_hh, w_out, b_out)


def rnn_reference(x, h_state, params):
    """Pure-JAX reference (lax.scan) for correctness checking."""
    w_ih, w_hh, b_ih, b_hh, w_out, b_out = params
    h0 = h_state[0]

    def step(h, x_t):
        h_new = jnp.tanh(x_t @ w_ih.T + b_ih + h @ w_hh.T + b_hh)
        y_t = h_new @ w_out.T + b_out
        return h_new, y_t

    x_tbi = jnp.transpose(x, (1, 0, 2))
    h_last, ys = jax.lax.scan(step, h0, x_tbi)
    return jnp.transpose(ys, (1, 0, 2)), h_last[None]


if __name__ == "__main__":
    key = jax.random.PRNGKey(0)
    k_param, k_x, k_h, k_x2 = jax.random.split(key, 4)

    B, T = 2, 8
    params = init_params(k_param)
    x = jax.random.normal(k_x, (B, T, INPUT_SIZE), jnp.float32)
    h_state = jax.random.normal(k_h, (1, B, HIDDEN), jnp.float32)

    outs, h_new = rnn_forward(x, h_state, params)
    jax.block_until_ready((outs, h_new))

    ref_outs, ref_h = rnn_reference(x, h_state, params)
    assert outs.shape == (B, T, 1) and h_new.shape == (1, B, HIDDEN)
    assert jnp.allclose(outs, ref_outs, atol=1e-5, rtol=1e-5)
    assert jnp.allclose(h_new, ref_h, atol=1e-5, rtol=1e-5)

    # Second check: multi-chunk path (T=16 split into two chunks of 8) to
    # exercise the hidden-state carry across grid iterations.
    T2 = 16
    x2 = jax.random.normal(k_x2, (B, T2, INPUT_SIZE), jnp.float32)
    outs2, h_new2 = rnn_forward(x2, h_state, params, t_chunk=8)
    jax.block_until_ready((outs2, h_new2))
    ref_outs2, ref_h2 = rnn_reference(x2, h_state, params)
    assert jnp.allclose(outs2, ref_outs2, atol=1e-5, rtol=1e-5)
    assert jnp.allclose(h_new2, ref_h2, atol=1e-5, rtol=1e-5)

    print("KERNEL_OK")
</pallas_src>

<mosaic_0001>
module attributes {stable_mosaic.version = 11 : i64} {
  func.func @_rnn_chunk_kernel(%arg0: i32, %arg1: memref<8x2x1xf32, #tpu.memory_space<vmem>>, %arg2: memref<2x32xf32, #tpu.memory_space<vmem>>, %arg3: memref<1x32xf32, #tpu.memory_space<vmem>>, %arg4: memref<32x32xf32, #tpu.memory_space<vmem>>, %arg5: memref<1x32xf32, #tpu.memory_space<vmem>>, %arg6: memref<1x32xf32, #tpu.memory_space<vmem>>, %arg7: memref<1xf32, #tpu.memory_space<smem>>, %arg8: memref<8x2xf32, #tpu.memory_space<vmem>>, %arg9: memref<2x32xf32, #tpu.memory_space<vmem>>) attributes {dimension_semantics = [#tpu.dimension_semantics<arbitrary>], iteration_bounds = array<i64: 1>, scalar_prefetch = 0 : i64, scratch_operands = 0 : i64, tpu.core_type = #tpu.core_type<tc>, window_params = [{transform_indices = @transform_0, window_bounds = array<i64: 8, 2, 1>}, {pipeline_mode = #tpu.pipeline_mode<synchronous>, transform_indices = @transform_1, window_bounds = array<i64: 2, 32>}, {pipeline_mode = #tpu.pipeline_mode<synchronous>, transform_indices = @transform_2, window_bounds = array<i64: 1, 32>}, {pipeline_mode = #tpu.pipeline_mode<synchronous>, transform_indices = @transform_3, window_bounds = array<i64: 32, 32>}, {pipeline_mode = #tpu.pipeline_mode<synchronous>, transform_indices = @transform_4, window_bounds = array<i64: 1, 32>}, {pipeline_mode = #tpu.pipeline_mode<synchronous>, transform_indices = @transform_5, window_bounds = array<i64: 1, 32>}, {transform_indices = @transform_6, window_bounds = array<i64: 1>}, {transform_indices = @transform_7, window_bounds = array<i64: 8, 2>}, {pipeline_mode = #tpu.pipeline_mode<synchronous>, transform_indices = @transform_8, window_bounds = array<i64: 2, 32>}]} {
    %c0_i32 = arith.constant 0 : i32
    %0 = arith.cmpi eq, %arg0, %c0_i32 : i32
    %1 = arith.extui %0 : i1 to i32
    %c0_i32_0 = arith.constant 0 : i32
    %2 = arith.cmpi ne, %1, %c0_i32_0 : i32
    scf.if %2 {
      %c0_53 = arith.constant 0 : index
      %c0_54 = arith.constant 0 : index
      %138 = vector.load %arg2[%c0_53, %c0_54] : memref<2x32xf32, #tpu.memory_space<vmem>>, vector<2x32xf32>
      %c0_55 = arith.constant 0 : index
      %c0_56 = arith.constant 0 : index
      %139 = vector.load %arg9[%c0_55, %c0_56] : memref<2x32xf32, #tpu.memory_space<vmem>>, vector<2x32xf32>
      tpu.vector_store %arg9[%c0_55, %c0_56], %138 {strides = array<i32>} : memref<2x32xf32, #tpu.memory_space<vmem>>, vector<2x32xf32>,
    } else {
    }
    %c0 = arith.constant 0 : index
    %c0_1 = arith.constant 0 : index
    %3 = vector.load %arg4[%c0, %c0_1] : memref<32x32xf32, #tpu.memory_space<vmem>>, vector<32x32xf32>
    %c0_2 = arith.constant 0 : index
    %c0_3 = arith.constant 0 : index
    %4 = vector.load %arg3[%c0_2, %c0_3] : memref<1x32xf32, #tpu.memory_space<vmem>>, vector<1x32xf32>
    %c0_4 = arith.constant 0 : index
    %c0_5 = arith.constant 0 : index
    %5 = vector.load %arg5[%c0_4, %c0_5] : memref<1x32xf32, #tpu.memory_space<vmem>>, vector<1x32xf32>
    %c0_6 = arith.constant 0 : index
    %c0_7 = arith.constant 0 : index
    %6 = vector.load %arg6[%c0_6, %c0_7] : memref<1x32xf32, #tpu.memory_space<vmem>>, vector<1x32xf32>
    %c0_8 = arith.constant 0 : index
    %7 = memref.load %arg7[%c0_8] : memref<1xf32, #tpu.memory_space<smem>>
    %c0_9 = arith.constant 0 : index
    %c0_10 = arith.constant 0 : index
    %8 = vector.load %arg9[%c0_9, %c0_10] : memref<2x32xf32, #tpu.memory_space<vmem>>, vector<2x32xf32>
    %c0_i32_11 = arith.constant 0 : i32
    %9 = arith.index_cast %c0_i32_11 : i32 to index
    %c0_12 = arith.constant 0 : index
    %c0_13 = arith.constant 0 : index
    %10 = vector.load %arg1[%9, %c0_12, %c0_13] : memref<8x2x1xf32, #tpu.memory_space<vmem>>, vector<1x2x1xf32>
    %11 = vector.shape_cast %10 : vector<1x2x1xf32> to vector<2x1xf32>
    %12 = vector.broadcast %11 : vector<2x1xf32> to vector<2x32xf32>
    %13 = vector.broadcast %4 : vector<1x32xf32> to vector<2x32xf32>
    %14 = arith.mulf %12, %13 : vector<2x32xf32>
    %15 = vector.broadcast %5 : vector<1x32xf32> to vector<2x32xf32>
    %16 = arith.addf %14, %15 : vector<2x32xf32>
    %cst = arith.constant dense<0.000000e+00> : vector<2x32xf32>
    %17 = tpu.matmul %8, %3, %cst {dimension_numbers = #tpu.dot_dimension_numbers<[1], [0], [0], [1], [0, 0, 1, 1], [], []>} : vector<2x32xf32>, vector<32x32xf32>, vector<2x32xf32> -> vector<2x32xf32>
    %18 = arith.addf %16, %17 : vector<2x32xf32>
    %19 = math.tanh %18 : vector<2x32xf32>
    %cst_14 = arith.constant dense<0.000000e+00> : vector<1x2xf32>
    %20 = tpu.matmul %6, %19, %cst_14 {dimension_numbers = #tpu.dot_dimension_numbers<[1], [1], [0], [0], [0, 0, 1, 0], [], []>} : vector<1x32xf32>, vector<2x32xf32>, vector<1x2xf32> -> vector<1x2xf32>
    %21 = vector.broadcast %7 : f32 to vector<1x2xf32>
    %22 = arith.addf %20, %21 : vector<1x2xf32>
    %23 = arith.index_cast %c0_i32_11 : i32 to index
    %c0_15 = arith.constant 0 : index
    %24 = vector.load %arg8[%23, %c0_15] : memref<8x2xf32, #tpu.memory_space<vmem>>, vector<1x2xf32>
    tpu.vector_store %arg8[%23, %c0_15], %22 {strides = array<i32>} : memref<8x2xf32, #tpu.memory_space<vmem>>, vector<1x2xf32>,
    %c1_i32 = arith.constant 1 : i32
    %25 = arith.index_cast %c1_i32 : i32 to index
    %c0_16 = arith.constant 0 : index
    %c0_17 = arith.constant 0 : index
    %26 = vector.load %arg1[%25, %c0_16, %c0_17] : memref<8x2x1xf32, #tpu.memory_space<vmem>>, vector<1x2x1xf32>
    %27 = vector.shape_cast %26 : vector<1x2x1xf32> to vector<2x1xf32>
    %28 = vector.broadcast %27 : vector<2x1xf32> to vector<2x32xf32>
    %29 = vector.broadcast %4 : vector<1x32xf32> to vector<2x32xf32>
    %30 = arith.mulf %28, %29 : vector<2x32xf32>
    %31 = vector.broadcast %5 : vector<1x32xf32> to vector<2x32xf32>
    %32 = arith.addf %30, %31 : vector<2x32xf32>
    %cst_18 = arith.constant dense<0.000000e+00> : vector<2x32xf32>
    %33 = tpu.matmul %19, %3, %cst_18 {dimension_numbers = #tpu.dot_dimension_numbers<[1], [0], [0], [1], [0, 0, 1, 1], [], []>} : vector<2x32xf32>, vector<32x32xf32>, vector<2x32xf32> -> vector<2x32xf32>
    %34 = arith.addf %32, %33 : vector<2x32xf32>
    %35 = math.tanh %34 : vector<2x32xf32>
    %cst_19 = arith.constant dense<0.000000e+00> : vector<1x2xf32>
    %36 = tpu.matmul %6, %35, %cst_19 {dimension_numbers = #tpu.dot_dimension_numbers<[1], [1], [0], [0], [0, 0, 1, 0], [], []>} : vector<1x32xf32>, vector<2x32xf32>, vector<1x2xf32> -> vector<1x2xf32>
    %37 = vector.broadcast %7 : f32 to vector<1x2xf32>
    %38 = arith.addf %36, %37 : vector<1x2xf32>
    %39 = arith.index_cast %c1_i32 : i32 to index
    %c0_20 = arith.constant 0 : index
    %40 = vector.load %arg8[%39, %c0_20] : memref<8x2xf32, #tpu.memory_space<vmem>>, vector<1x2xf32>
    tpu.vector_store %arg8[%39, %c0_20], %38 {strides = array<i32>} : memref<8x2xf32, #tpu.memory_space<vmem>>, vector<1x2xf32>,
    %c2_i32 = arith.constant 2 : i32
    %41 = arith.index_cast %c2_i32 : i32 to index
    %c0_21 = arith.constant 0 : index
    %c0_22 = arith.constant 0 : index
    %42 = vector.load %arg1[%41, %c0_21, %c0_22] : memref<8x2x1xf32, #tpu.memory_space<vmem>>, vector<1x2x1xf32>
    %43 = vector.shape_cast %42 : vector<1x2x1xf32> to vector<2x1xf32>
    %44 = vector.broadcast %43 : vector<2x1xf32> to vector<2x32xf32>
    %45 = vector.broadcast %4 : vector<1x32xf32> to vector<2x32xf32>
    %46 = arith.mulf %44, %45 : vector<2x32xf32>
    %47 = vector.broadcast %5 : vector<1x32xf32> to vector<2x32xf32>
    %48 = arith.addf %46, %47 : vector<2x32xf32>
    %cst_23 = arith.constant dense<0.000000e+00> : vector<2x32xf32>
    %49 = tpu.matmul %35, %3, %cst_23 {dimension_numbers = #tpu.dot_dimension_numbers<[1], [0], [0], [1], [0, 0, 1, 1], [], []>} : vector<2x32xf32>, vector<32x32xf32>, vector<2x32xf32> -> vector<2x32xf32>
    %50 = arith.addf %48, %49 : vector<2x32xf32>
    %51 = math.tanh %50 : vector<2x32xf32>
    %cst_24 = arith.constant dense<0.000000e+00> : vector<1x2xf32>
    %52 = tpu.matmul %6, %51, %cst_24 {dimension_numbers = #tpu.dot_dimension_numbers<[1], [1], [0], [0], [0, 0, 1, 0], [], []>} : vector<1x32xf32>, vector<2x32xf32>, vector<1x2xf32> -> vector<1x2xf32>
    %53 = vector.broadcast %7 : f32 to vector<1x2xf32>
    %54 = arith.addf %52, %53 : vector<1x2xf32>
    %55 = arith.index_cast %c2_i32 : i32 to index
    %c0_25 = arith.constant 0 : index
    %56 = vector.load %arg8[%55, %c0_25] : memref<8x2xf32, #tpu.memory_space<vmem>>, vector<1x2xf32>
    tpu.vector_store %arg8[%55, %c0_25], %54 {strides = array<i32>} : memref<8x2xf32, #tpu.memory_space<vmem>>, vector<1x2xf32>,
    %c3_i32 = arith.constant 3 : i32
    %57 = arith.index_cast %c3_i32 : i32 to index
    %c0_26 = arith.constant 0 : index
    %c0_27 = arith.constant 0 : index
    %58 = vector.load %arg1[%57, %c0_26, %c0_27] : memref<8x2x1xf32, #tpu.memory_space<vmem>>, vector<1x2x1xf32>
    %59 = vector.shape_cast %58 : vector<1x2x1xf32> to vector<2x1xf32>
    %60 = vector.broadcast %59 : vector<2x1xf32> to vector<2x32xf32>
    %61 = vector.broadcast %4 : vector<1x32xf32> to vector<2x32xf32>
    %62 = arith.mulf %60, %61 : vector<2x32xf32>
    %63 = vector.broadcast %5 : vector<1x32xf32> to vector<2x32xf32>
    %64 = arith.addf %62, %63 : vector<2x32xf32>
    %cst_28 = arith.constant dense<0.000000e+00> : vector<2x32xf32>
    %65 = tpu.matmul %51, %3, %cst_28 {dimension_numbers = #tpu.dot_dimension_numbers<[1], [0], [0], [1], [0, 0, 1, 1], [], []>} : vector<2x32xf32>, vector<32x32xf32>, vector<2x32xf32> -> vector<2x32xf32>
    %66 = arith.addf %64, %65 : vector<2x32xf32>
    %67 = math.tanh %66 : vector<2x32xf32>
    %cst_29 = arith.constant dense<0.000000e+00> : vector<1x2xf32>
    %68 = tpu.matmul %6, %67, %cst_29 {dimension_numbers = #tpu.dot_dimension_numbers<[1], [1], [0], [0], [0, 0, 1, 0], [], []>} : vector<1x32xf32>, vector<2x32xf32>, vector<1x2xf32> -> vector<1x2xf32>
    %69 = vector.broadcast %7 : f32 to vector<1x2xf32>
    %70 = arith.addf %68, %69 : vector<1x2xf32>
    %71 = arith.index_cast %c3_i32 : i32 to index
    %c0_30 = arith.constant 0 : index
    %72 = vector.load %arg8[%71, %c0_30] : memref<8x2xf32, #tpu.memory_space<vmem>>, vector<1x2xf32>
    tpu.vector_store %arg8[%71, %c0_30], %70 {strides = array<i32>} : memref<8x2xf32, #tpu.memory_space<vmem>>, vector<1x2xf32>,
    %c4_i32 = arith.constant 4 : i32
    %73 = arith.index_cast %c4_i32 : i32 to index
    %c0_31 = arith.constant 0 : index
    %c0_32 = arith.constant 0 : index
    %74 = vector.load %arg1[%73, %c0_31, %c0_32] : memref<8x2x1xf32, #tpu.memory_space<vmem>>, vector<1x2x1xf32>
    %75 = vector.shape_cast %74 : vector<1x2x1xf32> to vector<2x1xf32>
    %76 = vector.broadcast %75 : vector<2x1xf32> to vector<2x32xf32>
    %77 = vector.broadcast %4 : vector<1x32xf32> to vector<2x32xf32>
    %78 = arith.mulf %76, %77 : vector<2x32xf32>
    %79 = vector.broadcast %5 : vector<1x32xf32> to vector<2x32xf32>
    %80 = arith.addf %78, %79 : vector<2x32xf32>
    %cst_33 = arith.constant dense<0.000000e+00> : vector<2x32xf32>
    %81 = tpu.matmul %67, %3, %cst_33 {dimension_numbers = #tpu.dot_dimension_numbers<[1], [0], [0], [1], [0, 0, 1, 1], [], []>} : vector<2x32xf32>, vector<32x32xf32>, vector<2x32xf32> -> vector<2x32xf32>
    %82 = arith.addf %80, %81 : vector<2x32xf32>
    %83 = math.tanh %82 : vector<2x32xf32>
    %cst_34 = arith.constant dense<0.000000e+00> : vector<1x2xf32>
    %84 = tpu.matmul %6, %83, %cst_34 {dimension_numbers = #tpu.dot_dimension_numbers<[1], [1], [0], [0], [0, 0, 1, 0], [], []>} : vector<1x32xf32>, vector<2x32xf32>, vector<1x2xf32> -> vector<1x2xf32>
    %85 = vector.broadcast %7 : f32 to vector<1x2xf32>
    %86 = arith.addf %84, %85 : vector<1x2xf32>
    %87 = arith.index_cast %c4_i32 : i32 to index
    %c0_35 = arith.constant 0 : index
    %88 = vector.load %arg8[%87, %c0_35] : memref<8x2xf32, #tpu.memory_space<vmem>>, vector<1x2xf32>
    tpu.vector_store %arg8[%87, %c0_35], %86 {strides = array<i32>} : memref<8x2xf32, #tpu.memory_space<vmem>>, vector<1x2xf32>,
    %c5_i32 = arith.constant 5 : i32
    %89 = arith.index_cast %c5_i32 : i32 to index
    %c0_36 = arith.constant 0 : index
    %c0_37 = arith.constant 0 : index
    %90 = vector.load %arg1[%89, %c0_36, %c0_37] : memref<8x2x1xf32, #tpu.memory_space<vmem>>, vector<1x2x1xf32>
    %91 = vector.shape_cast %90 : vector<1x2x1xf32> to vector<2x1xf32>
    %92 = vector.broadcast %91 : vector<2x1xf32> to vector<2x32xf32>
    %93 = vector.broadcast %4 : vector<1x32xf32> to vector<2x32xf32>
    %94 = arith.mulf %92, %93 : vector<2x32xf32>
    %95 = vector.broadcast %5 : vector<1x32xf32> to vector<2x32xf32>
    %96 = arith.addf %94, %95 : vector<2x32xf32>
    %cst_38 = arith.constant dense<0.000000e+00> : vector<2x32xf32>
    %97 = tpu.matmul %83, %3, %cst_38 {dimension_numbers = #tpu.dot_dimension_numbers<[1], [0], [0], [1], [0, 0, 1, 1], [], []>} : vector<2x32xf32>, vector<32x32xf32>, vector<2x32xf32> -> vector<2x32xf32>
    %98 = arith.addf %96, %97 : vector<2x32xf32>
    %99 = math.tanh %98 : vector<2x32xf32>
    %cst_39 = arith.constant dense<0.000000e+00> : vector<1x2xf32>
    %100 = tpu.matmul %6, %99, %cst_39 {dimension_numbers = #tpu.dot_dimension_numbers<[1], [1], [0], [0], [0, 0, 1, 0], [], []>} : vector<1x32xf32>, vector<2x32xf32>, vector<1x2xf32> -> vector<1x2xf32>
    %101 = vector.broadcast %7 : f32 to vector<1x2xf32>
    %102 = arith.addf %100, %101 : vector<1x2xf32>
    %103 = arith.index_cast %c5_i32 : i32 to index
    %c0_40 = arith.constant 0 : index
    %104 = vector.load %arg8[%103, %c0_40] : memref<8x2xf32, #tpu.memory_space<vmem>>, vector<1x2xf32>
    tpu.vector_store %arg8[%103, %c0_40], %102 {strides = array<i32>} : memref<8x2xf32, #tpu.memory_space<vmem>>, vector<1x2xf32>,
    %c6_i32 = arith.constant 6 : i32
    %105 = arith.index_cast %c6_i32 : i32 to index
    %c0_41 = arith.constant 0 : index
    %c0_42 = arith.constant 0 : index
    %106 = vector.load %arg1[%105, %c0_41, %c0_42] : memref<8x2x1xf32, #tpu.memory_space<vmem>>, vector<1x2x1xf32>
    %107 = vector.shape_cast %106 : vector<1x2x1xf32> to vector<2x1xf32>
    %108 = vector.broadcast %107 : vector<2x1xf32> to vector<2x32xf32>
    %109 = vector.broadcast %4 : vector<1x32xf32> to vector<2x32xf32>
    %110 = arith.mulf %108, %109 : vector<2x32xf32>
    %111 = vector.broadcast %5 : vector<1x32xf32> to vector<2x32xf32>
    %112 = arith.addf %110, %111 : vector<2x32xf32>
    %cst_43 = arith.constant dense<0.000000e+00> : vector<2x32xf32>
    %113 = tpu.matmul %99, %3, %cst_43 {dimension_numbers = #tpu.dot_dimension_numbers<[1], [0], [0], [1], [0, 0, 1, 1], [], []>} : vector<2x32xf32>, vector<32x32xf32>, vector<2x32xf32> -> vector<2x32xf32>
    %114 = arith.addf %112, %113 : vector<2x32xf32>
    %115 = math.tanh %114 : vector<2x32xf32>
    %cst_44 = arith.constant dense<0.000000e+00> : vector<1x2xf32>
    %116 = tpu.matmul %6, %115, %cst_44 {dimension_numbers = #tpu.dot_dimension_numbers<[1], [1], [0], [0], [0, 0, 1, 0], [], []>} : vector<1x32xf32>, vector<2x32xf32>, vector<1x2xf32> -> vector<1x2xf32>
    %117 = vector.broadcast %7 : f32 to vector<1x2xf32>
    %118 = arith.addf %116, %117 : vector<1x2xf32>
    %119 = arith.index_cast %c6_i32 : i32 to index
    %c0_45 = arith.constant 0 : index
    %120 = vector.load %arg8[%119, %c0_45] : memref<8x2xf32, #tpu.memory_space<vmem>>, vector<1x2xf32>
    tpu.vector_store %arg8[%119, %c0_45], %118 {strides = array<i32>} : memref<8x2xf32, #tpu.memory_space<vmem>>, vector<1x2xf32>,
    %c7_i32 = arith.constant 7 : i32
    %121 = arith.index_cast %c7_i32 : i32 to index
    %c0_46 = arith.constant 0 : index
    %c0_47 = arith.constant 0 : index
    %122 = vector.load %arg1[%121, %c0_46, %c0_47] : memref<8x2x1xf32, #tpu.memory_space<vmem>>, vector<1x2x1xf32>
    %123 = vector.shape_cast %122 : vector<1x2x1xf32> to vector<2x1xf32>
    %124 = vector.broadcast %123 : vector<2x1xf32> to vector<2x32xf32>
    %125 = vector.broadcast %4 : vector<1x32xf32> to vector<2x32xf32>
    %126 = arith.mulf %124, %125 : vector<2x32xf32>
    %127 = vector.broadcast %5 : vector<1x32xf32> to vector<2x32xf32>
    %128 = arith.addf %126, %127 : vector<2x32xf32>
    %cst_48 = arith.constant dense<0.000000e+00> : vector<2x32xf32>
    %129 = tpu.matmul %115, %3, %cst_48 {dimension_numbers = #tpu.dot_dimension_numbers<[1], [0], [0], [1], [0, 0, 1, 1], [], []>} : vector<2x32xf32>, vector<32x32xf32>, vector<2x32xf32> -> vector<2x32xf32>
    %130 = arith.addf %128, %129 : vector<2x32xf32>
    %131 = math.tanh %130 : vector<2x32xf32>
    %cst_49 = arith.constant dense<0.000000e+00> : vector<1x2xf32>
    %132 = tpu.matmul %6, %131, %cst_49 {dimension_numbers = #tpu.dot_dimension_numbers<[1], [1], [0], [0], [0, 0, 1, 0], [], []>} : vector<1x32xf32>, vector<2x32xf32>, vector<1x2xf32> -> vector<1x2xf32>
    %133 = vector.broadcast %7 : f32 to vector<1x2xf32>
    %134 = arith.addf %132, %133 : vector<1x2xf32>
    %135 = arith.index_cast %c7_i32 : i32 to index
    %c0_50 = arith.constant 0 : index
    %136 = vector.load %arg8[%135, %c0_50] : memref<8x2xf32, #tpu.memory_space<vmem>>, vector<1x2xf32>
    tpu.vector_store %arg8[%135, %c0_50], %134 {strides = array<i32>} : memref<8x2xf32, #tpu.memory_space<vmem>>, vector<1x2xf32>,
    %c8_i32 = arith.constant 8 : i32
    %c0_51 = arith.constant 0 : index
    %c0_52 = arith.constant 0 : index
    %137 = vector.load %arg9[%c0_51, %c0_52] : memref<2x32xf32, #tpu.memory_space<vmem>>, vector<2x32xf32>
    tpu.vector_store %arg9[%c0_51, %c0_52], %131 {strides = array<i32>} : memref<2x32xf32, #tpu.memory_space<vmem>>, vector<2x32xf32>,
    return
  }
  func.func @transform_0(%arg0: i32) -> (i32, i32, i32) {
    %c0_i32 = arith.constant 0 : i32
    %c0_i32_0 = arith.constant 0 : i32
    %c0_i32_1 = arith.constant 0 : i32
    return %arg0, %c0_i32, %c0_i32_0 : i32, i32, i32
  }
  func.func @transform_1(%arg0: i32) -> (i32, i32) {
    %c0_i32 = arith.constant 0 : i32
    %c0_i32_0 = arith.constant 0 : i32
    %c0_i32_1 = arith.constant 0 : i32
    return %c0_i32, %c0_i32_0 : i32, i32
  }
  func.func @transform_2(%arg0: i32) -> (i32, i32) {
    %c0_i32 = arith.constant 0 : i32
    %c0_i32_0 = arith.constant 0 : i32
    %c0_i32_1 = arith.constant 0 : i32
    return %c0_i32, %c0_i32_0 : i32, i32
  }
  func.func @transform_3(%arg0: i32) -> (i32, i32) {
    %c0_i32 = arith.constant 0 : i32
    %c0_i32_0 = arith.constant 0 : i32
    %c0_i32_1 = arith.constant 0 : i32
    return %c0_i32, %c0_i32_0 : i32, i32
  }
  func.func @transform_4(%arg0: i32) -> (i32, i32) {
    %c0_i32 = arith.constant 0 : i32
    %c0_i32_0 = arith.constant 0 : i32
    %c0_i32_1 = arith.constant 0 : i32
    return %c0_i32, %c0_i32_0 : i32, i32
  }
  func.func @transform_5(%arg0: i32) -> (i32, i32) {
    %c0_i32 = arith.constant 0 : i32
    %c0_i32_0 = arith.constant 0 : i32
    %c0_i32_1 = arith.constant 0 : i32
    return %c0_i32, %c0_i32_0 : i32, i32
  }
  func.func @transform_6(%arg0: i32) -> i32 {
    %c0_i32 = arith.constant 0 : i32
    %c0_i32_0 = arith.constant 0 : i32
    return %c0_i32 : i32
  }
  func.func @transform_7(%arg0: i32) -> (i32, i32) {
    %c0_i32 = arith.constant 0 : i32
    %c0_i32_0 = arith.constant 0 : i32
    return %arg0, %c0_i32 : i32, i32
  }
  func.func @transform_8(%arg0: i32) -> (i32, i32) {
    %c0_i32 = arith.constant 0 : i32
    %c0_i32_0 = arith.constant 0 : i32
    %c0_i32_1 = arith.constant 0 : i32
    return %c0_i32, %c0_i32_0 : i32, i32
  }
}

</mosaic_0001>

<bundles_post_ra>
// kernel: tpu_custom_call.1
= control target key start
LH: loop header
LB: loop body
LE: loop exit
PB: predicated region body
PF: predicated region fallthrough
CT: control target
= control target key end

     0   :  { %15 = vsyncpa [#allocation4], 0  ;;  %s1973_s0 = inlined_call_operand.vmem [shape: f32[8,2,1], index: 0, kind: input, shape index: {}]   ;;  %s1974_s1 = inlined_call_operand.hbm [shape: f32[2,32], index: 1, kind: input, shape index: {}]   ;;  %s1975_s2 = inlined_call_operand.vmem [shape: f32[1,32], index: 2, kind: input, shape index: {}]   ;;  %s1976_s3 = inlined_call_operand.vmem [shape: f32[32,32], index: 3, kind: input, shape index: {}]   ;;  %s1977_s4 = inlined_call_operand.vmem [shape: f32[1,32], index: 4, kind: input, shape index: {}]   ;;  %s1978_s5 = inlined_call_operand.vmem [shape: f32[1,32], index: 5, kind: input, shape index: {}]   ;;  %s1979_s6 = inlined_call_operand.<no memory space> [shape: f32[1], index: 6, kind: input, shape index: {}]   ;;  %s1980_s7 = inlined_call_operand.vmem [shape: f32[8,2], index: 7, kind: output, shape index: {0}]   ;;  %s1981_s8 = inlined_call_operand.hbm [shape: f32[2,32], index: 8, kind: output, shape index: {1}]  }
   0x1   :  { %16 = vsyncpa [#allocation5], 0  ;;  %s1676_s27 = smov [#allocation3]   ;;  %s1628_s9 = scalar_lea.hbm %s1974_s1, 32 }
   0x2   :  { %s25_s28 = sshll.u32 %s1676_s27, 4  ;;  %p1629_p0 = scmp.ne.s32.totalorder %s1974_s1, %s1628_s9  ;;  %s26_s28 = int_to_ptr.vmem [resolvable:$true] %s25_s28 }
   0x3   :  { %p1632_p1 = scmp.lt.u32.totalorder %s1628_s9, %s1974_s1 }
   0x5   :  { %p1634_p2 = pnand %p1632_p1, %p1629_p0 }
   0x7   :  { %1637 = shalt.err (!%p1634_p2)
}
   0x8   :  { %s1638_s14 = scalar_lea.vmem %s26_s28, 32  ;;  %p1643_p4 = scmp.lt.s32.totalorder %s26_s28, %s26_s28 }
   0x9   :  { %p1639_p3 = scmp.ne.s32.totalorder %s26_s28, %s1638_s14  ;;  %p1644_p5 = scmp.lt.s32.totalorder %s1638_s14, %s1638_s14 }
   0xb   :  { %p1645_p6 = por %p1644_p5, %p1643_p4 }
   0xd   :  { %p1646_p7 = pnand %p1645_p6, %p1639_p3 }
   0xf   :  { %1649 = shalt.err (!%p1646_p7)
}
  0x10   :  { %28 = dma.hbm_to_vmem [thread:$0]  %s1974_s1, 32, %s26_s28, [#allocation4]  }
  0x11   :  { %1672 = dma.done.wait [#allocation4], 32  }
  0x12   :  { %1673 = vsyncadd [#allocation4], 4294967264  ;;  %v1677_v0 = vmov 0.0|0.0   ;;  %vm1678_vm0 = vmmov 0   ;;  %v1679_v1 = vmov 0.0   ;;  %v1680_v2 = vmov 0  }
  0x13   :  { %1556 = vmatprep.subr.bf16.mxu0 %v1677_v0  ;;  %1436 = vmatprep.mubr.msk.f32.mxu0 %vm1678_vm0, %v1679_v1  ;;  %vm47_vm1 = vcmask 254976   ;;  %v49_v3 = vld [vmem:[%s1976_s3] sm:$0xff]  ;;  %v50_v4 = vld [vmem:[%s1976_s3 + $0x8] sm:$0xff]  ;;  %v51_v5 = vld [vmem:[%s1976_s3 + $0x10] sm:$0xff]  ;;  %vm78_vm2 = vcmask 261120   ;;  %v1826_v29 = vstv %s1979_s6  ;;  %vm231_vm3 = vcmask 8192  }
  0x14   :  { %1610 = vset.pattern.permute.xlu0 %v1680_v2  ;;  %1439 = vmatprep.subr.mxu1 %v1679_v1  ;;  %v1754_v6 = vpack.c.bf16 %v50_v4, %v49_v3  ;;  %v52_v7 = vld [vmem:[%s1976_s3 + $0x18] sm:$0xff]  ;;  %v46_v8 = vld [vmem:[#allocation3] sm:$0x3]  ;;  %v1344_v11 = vld [vmem:[%s1973_s0 + $0x2] sm:$0x3]  ;;  %s1681_s10 = smov [#allocation6]  }
  0x15   :  { %1441 = vmatprep.mubr.msk.f32.mxu1 %vm1678_vm0, %v1679_v1  ;;  %1611 = vset.pattern.permute.xlu1 %v1680_v2  ;;  %v58_v9 = vld [vmem:[%s1973_s0] sm:$0x3]  ;;  %48 = vst.msk [vmem:[#allocation6] sm:$0x3] %vm47_vm1, %v46_v8  ;;  %v1764_v10 = vpack.c.bf16 %v52_v7, %v51_v5  ;;  %v1356_v12 = vld [vmem:[%s1973_s0 + $0x8] sm:$0x3] }
  0x16   :  { %61 = vperm.xlu0 %1610, %v58_v9   ;;  %1558 = vmatpush3.bf16.msra.mxu0 %v1754_v6  ;;  %v1364_v14 = vld [vmem:[%s1973_s0 + $0xc] sm:$0x3]  ;;  %v1784_v15 = vld [vmem:[%s1975_s2] ss:$0 sm:$0xff]  ;;  %v1348_v25 = vld [vmem:[%s1973_s0 + $0x4] sm:$0x3] }
  0x17   :  { %1559 = vmatprep.subr.bf16.mxu0 %v1677_v0  ;;  %v1790_v18 = vld [vmem:[%s1977_s4] ss:$0 sm:$0xff]  ;;  %392 = vperm.xlu1 %1611, %v1348_v25   ;;  %v1352_v26 = vld [vmem:[%s1973_s0 + $0x6] sm:$0x3]  ;;  %v1360_v27 = vld [vmem:[%s1973_s0 + $0xa] sm:$0x3] }
  0x18   :  { %v1797_v24 = vld [vmem:[%s1978_s5] sm:$0x1]  ;;  %v1368_v28 = vld [vmem:[%s1973_s0 + $0xe] sm:$0x3]  ;;  %s1328_s11 = sshll.u32 %s1681_s10, 4  ;;  %s1329_s11 = int_to_ptr.vmem [resolvable:$true] %s1328_s11 }
  0x19   :  { %s1650_s12 = scalar_lea.vmem %s1329_s11, 32  ;;  %p1655_p9 = scmp.lt.s32.totalorder %s1329_s11, %s1329_s11 }
  0x1a   :  { %237 = vperm.xlu0 %1610, %v1344_v11   ;;  %1561 = vmatpush3.bf16.msra.mxu0 %v1764_v10  ;;  %p1651_p8 = scmp.ne.s32.totalorder %s1329_s11, %s1650_s12  ;;  %p1656_p10 = scmp.lt.s32.totalorder %s1650_s12, %s1650_s12 }
  0x1b   :  { %1455 = vmatprep.subr.mxu0 %v1679_v1  ;;  %547 = vperm.xlu1 %1611, %v1352_v26  }
  0x1c   :  { %v57_v13 = vld [vmem:[#allocation6] sm:$0x3]  ;;  %p1657_p11 = por %p1656_p10, %p1655_p9 }
  0x1d   :  { %1437 = vmatmul.mubr.msk.f32.vlgmr.msra.gmra.mrb[0].mxu0 %vm78_vm2, %v57_v13 }
  0x1e   :  { %702 = vperm.xlu0 %1610, %v1356_v12   ;;  %1457 = vmatprep.mubr.msk.f32.mxu0 %vm1678_vm0, %v1679_v1  ;;  %p1658_p12 = pnand %p1657_p11, %p1651_p8 }
  0x1f   :  { %857 = vperm.xlu1 %1611, %v1360_v27  }
  0x22   :  { %1012 = vperm.xlu0 %1610, %v1364_v14  }
  0x23   :  { %1167 = vperm.xlu1 %1611, %v1368_v28  }
  0x95   :  { %v62_v16 = vpop.permute.xlu0 %61 }
  0x96   :  { %v70_v17 = vmul.f32 %v1784_v15, %v62_v16  ;;  %v393_v40 = vpop.permute.xlu1 %392 }
  0x97   :  { %v395_v42 = vmul.f32 %v1784_v15, %v393_v40 }
  0x98   :  { %v77_v19 = vadd.f32 %v1790_v18, %v70_v17 }
  0x99   :  { %v238_v33 = vpop.permute.xlu0 %237  ;;  %v396_v45 = vadd.f32 %v1790_v18, %v395_v42 }
  0x9a   :  { %v240_v34 = vmul.f32 %v1784_v15, %v238_v33  ;;  %v548_v53 = vpop.permute.xlu1 %547 }
  0x9b   :  { %v550_v54 = vmul.f32 %v1784_v15, %v548_v53 }
  0x9c   :  { %v241_v35 = vadd.f32 %v1790_v18, %v240_v34 }
  0x9d   :  { %v551_v55 = vadd.f32 %v1790_v18, %v550_v54  ;;  %v703_v63 = vpop.permute.xlu0 %702 }
  0x9e   :  { %v705_v2 = vmul.f32 %v1784_v15, %v703_v63  ;;  %v858_v13 = vpop.permute.xlu1 %857 }
  0x9f   :  { %v860_v14 = vmul.f32 %v1784_v15, %v858_v13 }
  0xa0   :  { %v706_v3 = vadd.f32 %v1790_v18, %v705_v2 }
  0xa1   :  { %v861_v16 = vadd.f32 %v1790_v18, %v860_v14 }
  0xa2   :  { %v1168_v34 = vpop.permute.xlu1 %1167 }
  0xf0   :  { %v148_v20 = vpop.f32.mrb[0].mxu0 }
  0xf1   :  { %v152_v21 = vadd.f32 %v148_v20, %v77_v19  ;;  %v1438_v22 = vpop.f32.mrb[1].mxu0 }
  0xf2   :  { %v1013_v22 = vpop.permute.xlu0 %1012 }
  0xf3   :  { %1612 = vtanh.f32 %v152_v21  ;;  %v1015_v27 = vmul.f32 %v1784_v15, %v1013_v22 }
  0xf5   :  { %v1016_v28 = vadd.f32 %v1790_v18, %v1015_v27 }
  0xfd   :  { %v1613_v23 = vpop.eup %1612 }
  0xfe   :  { %1440 = vmatpush3.xpose.msk.msra.mxu1 %vm78_vm2, %v1613_v23 }
  0xff   :  { %1562 = vmatprep.subr.bf16.mxu1 %v1677_v0 }
 0x101   :  { %1442 = vmatmul.mubr.msk.f32.vlgmr.msra.gmra.mrb[0].mxu1 %vm78_vm2, %v1797_v24 }
 0x102   :  { %1564 = vmatpush3.bf16.msra.mxu1 %v1754_v6  ;;  %1452 = vmatprep.mubr.msk.f32.mxu1 %vm1678_vm0, %v1679_v1 }
 0x103   :  { %1565 = vmatprep.subr.bf16.mxu1 %v1677_v0 }
 0x106   :  { %1567 = vmatpush3.bf16.msra.mxu1 %v1764_v10 }
 0x107   :  { %1471 = vmatprep.subr.mxu1 %v1679_v1 }
 0x109   :  { %1453 = vmatmul.mubr.msk.f32.vlgmr.msra.gmra.mrb[2].mxu1 %vm78_vm2, %v1613_v23 }
 0x10a   :  { %1473 = vmatprep.mubr.msk.f32.mxu1 %vm1678_vm0, %v1679_v1 }
 0x1d4   :  { %v227_v30 = vpop.f32.mrb[0].mxu1 }
 0x1d5   :  { %v228_v31 = vadd.f32 %v227_v30, %v1826_v29  ;;  %v1443_v32 = vpop.f32.mrb[1].mxu1 }
 0x1d7   :  { %232 = vst.msk [vmem:[%s1980_s7] sm:$0x1] %vm231_vm3, %v228_v31 }
 0x1dc   :  { %v308_v36 = vpop.f32.mrb[2].mxu1 }
 0x1dd   :  { %v312_v37 = vadd.f32 %v308_v36, %v241_v35  ;;  %v1454_v38 = vpop.f32.mrb[3].mxu1 }
 0x1de   :  { %v1170_v38 = vmul.f32 %v1784_v15, %v1168_v34 }
 0x1df   :  { %1614 = vtanh.f32 %v312_v37 }
 0x1e9   :  { %v1615_v39 = vpop.eup %1614 }
 0x1ea   :  { %1456 = vmatpush3.xpose.msk.msra.mxu0 %vm78_vm2, %v1615_v39 }
 0x1eb   :  { %1568 = vmatprep.subr.bf16.mxu0 %v1677_v0 }
 0x1ed   :  { %1458 = vmatmul.mubr.msk.f32.vlgmr.msra.gmra.mrb[2].mxu0 %vm78_vm2, %v1797_v24 }
 0x1ee   :  { %1570 = vmatpush3.bf16.msra.mxu0 %v1754_v6  ;;  %1468 = vmatprep.mubr.msk.f32.mxu0 %vm1678_vm0, %v1679_v1 }
 0x1ef   :  { %1571 = vmatprep.subr.bf16.mxu0 %v1677_v0 }
 0x1f2   :  { %1573 = vmatpush3.bf16.msra.mxu0 %v1764_v10 }
 0x1f3   :  { %1487 = vmatprep.subr.mxu0 %v1679_v1 }
 0x1f5   :  { %1469 = vmatmul.mubr.msk.f32.vlgmr.msra.gmra.mrb[4].mxu0 %vm78_vm2, %v1615_v39 }
 0x1f6   :  { %1489 = vmatprep.mubr.msk.f32.mxu0 %vm1678_vm0, %v1679_v1 }
 0x2c0   :  { %v383_v41 = vpop.f32.mrb[2].mxu0 }
 0x2c1   :  { %v384_v43 = vadd.f32 %v383_v41, %v1826_v29  ;;  %v1459_v44 = vpop.f32.mrb[3].mxu0 }
 0x2c3   :  { %387 = vst.msk [vmem:[%s1980_s7 + $0x1] sm:$0x1] %vm231_vm3, %v384_v43 }
 0x2c8   :  { %v463_v46 = vpop.f32.mrb[4].mxu0 }
 0x2c9   :  { %v467_v47 = vadd.f32 %v463_v46, %v396_v45  ;;  %v1470_v48 = vpop.f32.mrb[5].mxu0 }
 0x2cb   :  { %1616 = vtanh.f32 %v467_v47 }
 0x2d5   :  { %v1617_v49 = vpop.eup %1616 }
 0x2d6   :  { %1472 = vmatpush3.xpose.msk.msra.mxu1 %vm78_vm2, %v1617_v49 }
 0x2d7   :  { %1574 = vmatprep.subr.bf16.mxu1 %v1677_v0 }
 0x2d9   :  { %1474 = vmatmul.mubr.msk.f32.vlgmr.msra.gmra.mrb[4].mxu1 %vm78_vm2, %v1797_v24 }
 0x2da   :  { %1576 = vmatpush3.bf16.msra.mxu1 %v1754_v6  ;;  %1484 = vmatprep.mubr.msk.f32.mxu1 %vm1678_vm0, %v1679_v1 }
 0x2db   :  { %1577 = vmatprep.subr.bf16.mxu1 %v1677_v0 }
 0x2de   :  { %1579 = vmatpush3.bf16.msra.mxu1 %v1764_v10 }
 0x2df   :  { %1503 = vmatprep.subr.mxu1 %v1679_v1 }
 0x2e1   :  { %1485 = vmatmul.mubr.msk.f32.vlgmr.msra.gmra.mrb[6].mxu1 %vm78_vm2, %v1617_v49 }
 0x2e2   :  { %1505 = vmatprep.mubr.msk.f32.mxu1 %vm1678_vm0, %v1679_v1 }
 0x3ac   :  { %v538_v50 = vpop.f32.mrb[4].mxu1 }
 0x3ad   :  { %v539_v51 = vadd.f32 %v538_v50, %v1826_v29  ;;  %v1475_v52 = vpop.f32.mrb[5].mxu1 }
 0x3af   :  { %542 = vst.msk [vmem:[%s1980_s7 + $0x2] sm:$0x1] %vm231_vm3, %v539_v51 }
 0x3b4   :  { %v618_v56 = vpop.f32.mrb[6].mxu1 }
 0x3b5   :  { %v622_v57 = vadd.f32 %v618_v56, %v551_v55  ;;  %v1486_v58 = vpop.f32.mrb[7].mxu1 }
 0x3b7   :  { %1618 = vtanh.f32 %v622_v57 }
 0x3c1   :  { %v1619_v59 = vpop.eup %1618 }
 0x3c2   :  { %1488 = vmatpush3.xpose.msk.msra.mxu0 %vm78_vm2, %v1619_v59 }
 0x3c3   :  { %1580 = vmatprep.subr.bf16.mxu0 %v1677_v0 }
 0x3c5   :  { %1490 = vmatmul.mubr.msk.f32.vlgmr.msra.gmra.mrb[6].mxu0 %vm78_vm2, %v1797_v24 }
 0x3c6   :  { %1582 = vmatpush3.bf16.msra.mxu0 %v1754_v6  ;;  %1500 = vmatprep.mubr.msk.f32.mxu0 %vm1678_vm0, %v1679_v1 }
 0x3c7   :  { %1583 = vmatprep.subr.bf16.mxu0 %v1677_v0 }
 0x3ca   :  { %1585 = vmatpush3.bf16.msra.mxu0 %v1764_v10 }
 0x3cb   :  { %1519 = vmatprep.subr.mxu0 %v1679_v1 }
 0x3cd   :  { %1501 = vmatmul.mubr.msk.f32.vlgmr.msra.gmra.mrb[8].mxu0 %vm78_vm2, %v1619_v59 }
 0x3ce   :  { %1521 = vmatprep.mubr.msk.f32.mxu0 %vm1678_vm0, %v1679_v1 }
 0x498   :  { %v693_v60 = vpop.f32.mrb[6].mxu0 }
 0x499   :  { %v694_v61 = vadd.f32 %v693_v60, %v1826_v29  ;;  %v1491_v62 = vpop.f32.mrb[7].mxu0 }
 0x49b   :  { %697 = vst.msk [vmem:[%s1980_s7 + $0x3] sm:$0x1] %vm231_vm3, %v694_v61 }
 0x4a0   :  { %v773_v4 = vpop.f32.mrb[8].mxu0 }
 0x4a1   :  { %v777_v5 = vadd.f32 %v773_v4, %v706_v3  ;;  %v1502_v7 = vpop.f32.mrb[9].mxu0 }
 0x4a3   :  { %1620 = vtanh.f32 %v777_v5 }
 0x4ad   :  { %v1621_v8 = vpop.eup %1620 }
 0x4ae   :  { %1504 = vmatpush3.xpose.msk.msra.mxu1 %vm78_vm2, %v1621_v8 }
 0x4af   :  { %1586 = vmatprep.subr.bf16.mxu1 %v1677_v0 }
 0x4b1   :  { %1506 = vmatmul.mubr.msk.f32.vlgmr.msra.gmra.mrb[8].mxu1 %vm78_vm2, %v1797_v24 }
 0x4b2   :  { %1588 = vmatpush3.bf16.msra.mxu1 %v1754_v6  ;;  %1516 = vmatprep.mubr.msk.f32.mxu1 %vm1678_vm0, %v1679_v1 }
 0x4b3   :  { %1589 = vmatprep.subr.bf16.mxu1 %v1677_v0 }
 0x4b6   :  { %1591 = vmatpush3.bf16.msra.mxu1 %v1764_v10 }
 0x4b7   :  { %1535 = vmatprep.subr.mxu1 %v1679_v1 }
 0x4b9   :  { %1517 = vmatmul.mubr.msk.f32.vlgmr.msra.gmra.mrb[10].mxu1 %vm78_vm2, %v1621_v8 }
 0x4ba   :  { %1537 = vmatprep.mubr.msk.f32.mxu1 %vm1678_vm0, %v1679_v1 }
 0x584   :  { %v848_v9 = vpop.f32.mrb[8].mxu1 }
 0x585   :  { %v849_v11 = vadd.f32 %v848_v9, %v1826_v29  ;;  %v1507_v12 = vpop.f32.mrb[9].mxu1 }
 0x587   :  { %852 = vst.msk [vmem:[%s1980_s7 + $0x4] sm:$0x1] %vm231_vm3, %v849_v11 }
 0x58c   :  { %v928_v17 = vpop.f32.mrb[10].mxu1 }
 0x58d   :  { %v932_v19 = vadd.f32 %v928_v17, %v861_v16  ;;  %v1518_v20 = vpop.f32.mrb[11].mxu1 }
 0x58f   :  { %1622 = vtanh.f32 %v932_v19 }
 0x599   :  { %v1623_v21 = vpop.eup %1622 }
 0x59a   :  { %1520 = vmatpush3.xpose.msk.msra.mxu0 %vm78_vm2, %v1623_v21 }
 0x59b   :  { %1592 = vmatprep.subr.bf16.mxu0 %v1677_v0 }
 0x59d   :  { %1522 = vmatmul.mubr.msk.f32.vlgmr.msra.gmra.mrb[10].mxu0 %vm78_vm2, %v1797_v24 }
 0x59e   :  { %1594 = vmatpush3.bf16.msra.mxu0 %v1754_v6  ;;  %1532 = vmatprep.mubr.msk.f32.mxu0 %vm1678_vm0, %v1679_v1 }
 0x59f   :  { %1595 = vmatprep.subr.bf16.mxu0 %v1677_v0 }
 0x5a2   :  { %1597 = vmatpush3.bf16.msra.mxu0 %v1764_v10 }
 0x5a3   :  { %1551 = vmatprep.subr.mxu0 %v1679_v1 }
 0x5a5   :  { %1533 = vmatmul.mubr.msk.f32.vlgmr.msra.gmra.mrb[12].mxu0 %vm78_vm2, %v1623_v21 }
 0x5a6   :  { %1553 = vmatprep.mubr.msk.f32.mxu0 %vm1678_vm0, %v1679_v1 }
 0x670   :  { %v1003_v23 = vpop.f32.mrb[10].mxu0 }
 0x671   :  { %v1004_v25 = vadd.f32 %v1003_v23, %v1826_v29  ;;  %v1523_v26 = vpop.f32.mrb[11].mxu0 }
 0x673   :  { %1007 = vst.msk [vmem:[%s1980_s7 + $0x5] sm:$0x1] %vm231_vm3, %v1004_v25 }
 0x678   :  { %v1083_v30 = vpop.f32.mrb[12].mxu0 }
 0x679   :  { %v1087_v31 = vadd.f32 %v1083_v30, %v1016_v28  ;;  %v1534_v32 = vpop.f32.mrb[13].mxu0 }
 0x67b   :  { %1624 = vtanh.f32 %v1087_v31 }
 0x685   :  { %v1625_v33 = vpop.eup %1624 }
 0x686   :  { %1536 = vmatpush3.xpose.msk.msra.mxu1 %vm78_vm2, %v1625_v33 }
 0x687   :  { %1598 = vmatprep.subr.bf16.mxu1 %v1677_v0 }
 0x689   :  { %1538 = vmatmul.mubr.msk.f32.vlgmr.msra.gmra.mrb[12].mxu1 %vm78_vm2, %v1797_v24 }
 0x68a   :  { %1600 = vmatpush3.bf16.msra.mxu1 %v1754_v6  ;;  %1548 = vmatprep.mubr.msk.f32.mxu1 %vm1678_vm0, %v1679_v1  ;;  %v1171_v1 = vadd.f32 %v1790_v18, %v1170_v38 }
 0x68b   :  { %1601 = vmatprep.subr.bf16.mxu1 %v1677_v0 }
 0x68e   :  { %1603 = vmatpush3.bf16.msra.mxu1 %v1764_v10 }
 0x691   :  { %1549 = vmatmul.mubr.msk.f32.vlgmr.msra.gmra.mrb[14].mxu1 %vm78_vm2, %v1625_v33 }
 0x75c   :  { %v1158_v35 = vpop.f32.mrb[12].mxu1 }
 0x75d   :  { %v1159_v36 = vadd.f32 %v1158_v35, %v1826_v29  ;;  %v1539_v37 = vpop.f32.mrb[13].mxu1 }
 0x75f   :  { %1162 = vst.msk [vmem:[%s1980_s7 + $0x6] sm:$0x1] %vm231_vm3, %v1159_v36 }
 0x764   :  { %v1238_v6 = vpop.f32.mrb[14].mxu1 }
 0x765   :  { %v1242_v0 = vadd.f32 %v1238_v6, %v1171_v1  ;;  %v1550_v39 = vpop.f32.mrb[15].mxu1 }
 0x767   :  { %1626 = vtanh.f32 %v1242_v0 }
 0x771   :  { %v1627_v10 = vpop.eup %1626 }
 0x772   :  { %1319 = vst.msk [vmem:[#allocation6] sm:$0x3] %vm47_vm1, %v1627_v10  ;;  %1552 = vmatpush3.xpose.msk.msra.mxu0 %vm78_vm2, %v1627_v10 }
 0x775   :  { %1554 = vmatmul.mubr.msk.f32.vlgmr.msra.gmra.mrb[14].mxu0 %vm78_vm2, %v1797_v24 }
 0x776   :  { %1661 = shalt.err (!%p1658_p12)
}
 0x777   :  { %s1662_s4 = scalar_lea.hbm %s1981_s8, 32 }
 0x778   :  { %p1663_p13 = scmp.ne.s32.totalorder %s1981_s8, %s1662_s4  ;;  %p1666_p0 = scmp.lt.u32.totalorder %s1662_s4, %s1981_s8 }
 0x77a   :  { %p1668_p1 = pnand %p1666_p0, %p1663_p13 }
 0x77c   :  { %1671 = shalt.err (!%p1668_p1)
}
 0x77d   :  { %1331 = dma.vmem_to_hbm [thread:$0]  %s1329_s11, 32, %s1981_s8, [#allocation5]  }
 0x848   :  { %v1313_v15 = vpop.f32.mrb[14].mxu0 }
 0x849   :  { %v1314_v18 = vadd.f32 %v1313_v15, %v1826_v29  ;;  %v1555_v24 = vpop.f32.mrb[15].mxu0 }
 0x84b   :  { %1317 = vst.msk [vmem:[%s1980_s7 + $0x7] sm:$0x1] %vm231_vm3, %v1314_v18 }
 0x84c   :  { %1674 = dma.done.wait [#allocation5], 32  }
 0x84d   :  { %1675 = vsyncadd [#allocation5], 4294967264 }
 0x84e   :  { %1337 = vsyncpa [#allocation4], 1 }
 0x84f   :  { %1338 = vsyncpa [#allocation5], 1 }

</bundles_post_ra>
